<compile_context>
chip_gen: v7x
topology: tpu7x:2x2x1
jax: 0.10.0
libtpu: 0.0.40
codegen_flags: <defaults>
</compile_context>

<pallas_src>
import functools
import math

import jax
import jax.numpy as jnp
from jax.experimental import pallas as pl
from jax.experimental.pallas import tpu as pltpu


def _round_up(x, m):
    return ((x + m - 1) // m) * m


def _vmem_capacity_bytes():
    try:
        return int(pltpu.get_tpu_info().vmem_capacity_bytes)
    except Exception:
        return 64 << 20  # conservative fallback (v7x per-TensorCore VMEM)


def _footprint_bytes(Bt, TLc, Lq_pad, D, out_width, mm_bytes):
    """Rough per-grid-step VMEM footprint with default double-buffering."""
    ctx_blk = Bt * TLc * D * 4 * 2
    out_blk = Bt * TLc * out_width * 4 * 2
    qh_blk = Bt * Lq_pad * D * mm_bytes * 2
    qht_blk = Bt * D * Lq_pad * mm_bytes * 2
    bias_blk = Bt * Lq_pad * 4 * 2
    tmp = 4 * Bt * TLc * Lq_pad * 4          # scores / softmax temporaries
    return ctx_blk + out_blk + qh_blk + qht_blk + bias_blk + tmp


def _attn_kernel(ctx_ref, qh_ref, qht_ref, bias_ref, out_ref, *,
                 scale, scale_scores, fuse_concat, hidden):
    ctx = ctx_ref[...]          # (Bt, TLc, D)  f32, original values (passthrough)
    qh = qh_ref[...]            # (Bt, Lq, D)   matmul dtype (bf16 typically)
    qh_t = qht_ref[...]         # (Bt, D, Lq)   matmul dtype, pre-transposed
    bias = bias_ref[...]        # (Bt, 1, Lq)   f32 additive mask: 0 keep, -1e30 pad

    mm_dtype = qh.dtype
    if scale_scores:
        ctx_mm = ctx.astype(mm_dtype)
    else:
        ctx_mm = (ctx * scale).astype(mm_dtype)   # fold scale into the smaller side

    # scores[b,c,q] = sum_d ctx[b,c,d] * qh_t[b,d,q]  (natural MXU layout, f32 acc)
    scores = jnp.einsum("bcd,bdq->bcq", ctx_mm, qh_t,
                        preferred_element_type=jnp.float32)
    if scale_scores:
        scores = scores * scale

    # Masked softmax over the question axis (all f32).
    masked = scores + bias
    m = jnp.max(masked, axis=-1, keepdims=True)
    p = jnp.exp(masked - m)
    denom = jnp.sum(p, axis=-1, keepdims=True)
    dist = p * pl.reciprocal(denom, approx=True)

    # attn[b,c,d] = sum_q dist[b,c,q] * qh[b,q,d]
    attn = jnp.einsum("bcq,bqd->bcd", dist.astype(mm_dtype), qh,
                      preferred_element_type=jnp.float32)

    if fuse_concat:
        out_ref[:, :, :hidden] = ctx.astype(out_ref.dtype)
        out_ref[:, :, hidden:] = attn.astype(out_ref.dtype)
    else:
        out_ref[...] = attn.astype(out_ref.dtype)


def dot_product_attention(context_hiddens, context_mask, question_hiddens,
                          question_mask, *, block_lc=512, use_bf16_matmul=True,
                          out_dtype=None, vmem_limit_bytes=None):
    """Pallas implementation of DotProductAttention.forward.

    context_mask is accepted for signature parity with the PyTorch module but,
    exactly as in the reference forward, is never used.
    """
    del context_mask  # unused by the reference forward pass
    B, Lc, D = context_hiddens.shape
    Bq, Lq, Dq = question_hiddens.shape
    assert B == Bq and D == Dq, "bmm requires matching batch and hidden dims"
    scale = 1.0 / math.sqrt(D)  # question_dim == hidden size of question_hiddens
    if out_dtype is None:
        out_dtype = context_hiddens.dtype

    Lq_pad = _round_up(Lq, 128)
    mm_dtype = jnp.bfloat16 if use_bf16_matmul else context_hiddens.dtype
    mm_bytes = jnp.dtype(mm_dtype).itemsize

    fuse_concat = (D % 128 == 0)          # both output halves lane-aligned
    out_width = 2 * D if fuse_concat else D

    # ---- VMEM / generation aware tile sizes --------------------------------
    vmem_cap = _vmem_capacity_bytes()
    budget = int(0.7 * vmem_cap)
    if vmem_limit_bytes is None:
        vmem_limit_bytes = budget

    if Lc >= 128:
        TLc = min(_round_up(block_lc, 128), _round_up(Lc, 128))
    else:
        TLc = _round_up(Lc, 8)
    rows_target = 1024 if budget >= (70 << 20) else 512   # bigger steps on 128 MiB parts
    Bt = max(1, min(B, max(1, rows_target // TLc)))
    while _footprint_bytes(Bt, TLc, Lq_pad, D, out_width, mm_bytes) > budget:
        if Bt > 1:
            Bt = max(1, Bt // 2)
        elif TLc > 8:
            TLc = max(8, _round_up(TLc // 2, 8))
        else:
            break
    Lc_pad = _round_up(Lc, TLc)

    # v7x has 2 TensorCores: make sure the parallel grid has >= 2 steps.
    if (_round_up(B, Bt) // Bt) * (Lc_pad // TLc) < 2:
        if Bt > 1:
            Bt = max(1, Bt // 2)
        elif TLc > 8:
            TLc = max(8, _round_up(TLc // 2, 8))
            Lc_pad = _round_up(Lc, TLc)
    B_pad = _round_up(B, Bt)

    # ---- pad inputs (padded question positions / batch rows are masked) ----
    ctx = context_hiddens
    if Lc_pad != Lc or B_pad != B:
        ctx = jnp.pad(ctx, ((0, B_pad - B), (0, Lc_pad - Lc), (0, 0)))

    qh = question_hiddens.astype(mm_dtype)          # bf16 cast hoisted out of the kernel
    qmask = question_mask.astype(jnp.float32)
    if Lq_pad != Lq or B_pad != B:
        qh = jnp.pad(qh, ((0, B_pad - B), (0, Lq_pad - Lq), (0, 0)))
        qmask = jnp.pad(qmask, ((0, B_pad - B), (0, Lq_pad - Lq)))
    qh_t = jnp.swapaxes(qh, 1, 2)                   # (B_pad, D, Lq_pad), transposed once
    # Additive mask bias: 0 where keep, -1e30 where masked / padded (kept in f32).
    mask_bias = ((qmask - 1.0) * 1e30).reshape(B_pad, 1, Lq_pad)

    kernel = functools.partial(_attn_kernel, scale=scale,
                               scale_scores=(Lq_pad < D),
                               fuse_concat=fuse_concat, hidden=D)

    out = pl.pallas_call(
        kernel,
        out_shape=jax.ShapeDtypeStruct((B_pad, Lc_pad, out_width), out_dtype),
        grid_spec=pltpu.PrefetchScalarGridSpec(
            num_scalar_prefetch=0,
            grid=(B_pad // Bt, Lc_pad // TLc),
            in_specs=[
                pl.BlockSpec((Bt, TLc, D), lambda b, c: (b, c, 0)),       # context tile
                pl.BlockSpec((Bt, Lq_pad, D), lambda b, c: (b, 0, 0)),    # question (resident over c)
                pl.BlockSpec((Bt, D, Lq_pad), lambda b, c: (b, 0, 0)),    # question^T (resident over c)
                pl.BlockSpec((Bt, 1, Lq_pad), lambda b, c: (b, 0, 0)),    # mask bias (resident over c)
            ],
            out_specs=pl.BlockSpec((Bt, TLc, out_width), lambda b, c: (b, c, 0)),
        ),
        compiler_params=pltpu.CompilerParams(
            dimension_semantics=("parallel", "parallel"),
            vmem_limit_bytes=vmem_limit_bytes),
    )(ctx, qh, qh_t, mask_bias)

    if fuse_concat:
        return out[:B, :Lc, :]
    attn = out[:B, :Lc, :]
    return jnp.concatenate([context_hiddens.astype(out_dtype), attn], axis=2)


def _reference(context_hiddens, question_hiddens, question_mask):
    """Pure-JAX (f32) reference mirroring the PyTorch forward."""
    D = question_hiddens.shape[-1]
    scale = 1.0 / jnp.sqrt(jnp.float32(D))
    scores = jnp.einsum("bcd,bqd->bcq", context_hiddens, question_hiddens) * scale
    mask = question_mask.astype(jnp.float32)[:, None, :]
    masked = mask * scores + (1.0 - mask) * (-1e30)
    dist = jax.nn.softmax(masked, axis=2)
    attn = jnp.einsum("bcq,bqd->bcd", dist, question_hiddens)
    return jnp.concatenate([context_hiddens, attn], axis=2)


if __name__ == "__main__":
    key = jax.random.PRNGKey(0)

    def run_case(B, Lc, Lq, D, case_key):
        k_ctx, k_q = jax.random.split(case_key, 2)
        ctx = jax.random.normal(k_ctx, (B, Lc, D), dtype=jnp.float32)
        qh = jax.random.normal(k_q, (B, Lq, D), dtype=jnp.float32)
        cmask = jnp.ones((B, Lc), dtype=jnp.float32)
        qmask = jnp.ones((B, Lq), dtype=jnp.float32)
        # Last batch element has two padded (masked) question positions.
        qmask = qmask.at[-1, Lq - 2:].set(0.0)

        out = dot_product_attention(ctx, cmask, qh, qmask)
        out = jax.block_until_ready(out)

        ref = _reference(ctx, qh, qmask)
        assert out.shape == (B, Lc, 2 * D)
        # bf16 MXU inputs (f32 accumulation) + approx EUP reciprocal => loosened
        # tolerance vs the all-f32 reference.
        assert jnp.allclose(out, ref, atol=5e-2, rtol=5e-2), "mismatch vs reference"

    k1, k2 = jax.random.split(key)
    run_case(B=2, Lc=16, Lq=8, D=32, case_key=k1)    # D % 128 != 0 -> wrapper-concat path
    run_case(B=3, Lc=20, Lq=10, D=128, case_key=k2)  # fused-concat lane-aligned fast path

    print("KERNEL_OK")
</pallas_src>

<mosaic_0001>
module attributes {stable_mosaic.version = 11 : i64} {
  func.func @_attn_kernel(%arg0: i32, %arg1: i32, %arg2: memref<1x16x32xf32, #tpu.memory_space<vmem>>, %arg3: memref<1x128x32xbf16, #tpu.memory_space<vmem>>, %arg4: memref<1x32x128xbf16, #tpu.memory_space<vmem>>, %arg5: memref<1x1x128xf32, #tpu.memory_space<vmem>>, %arg6: memref<1x16x32xf32, #tpu.memory_space<vmem>>) attributes {dimension_semantics = [#tpu.dimension_semantics<parallel>, #tpu.dimension_semantics<parallel>], iteration_bounds = array<i64: 2, 1>, scalar_prefetch = 0 : i64, scratch_operands = 0 : i64, tpu.core_type = #tpu.core_type<tc>, window_params = [{transform_indices = @transform_0, window_bounds = array<i64: 1, 16, 32>}, {transform_indices = @transform_1, window_bounds = array<i64: 1, 128, 32>}, {transform_indices = @transform_2, window_bounds = array<i64: 1, 32, 128>}, {transform_indices = @transform_3, window_bounds = array<i64: 1, 1, 128>}, {transform_indices = @transform_4, window_bounds = array<i64: 1, 16, 32>}]} {
    %c0 = arith.constant 0 : index
    %c0_0 = arith.constant 0 : index
    %c0_1 = arith.constant 0 : index
    %0 = vector.load %arg2[%c0, %c0_0, %c0_1] : memref<1x16x32xf32, #tpu.memory_space<vmem>>, vector<1x16x32xf32>
    %c0_2 = arith.constant 0 : index
    %c0_3 = arith.constant 0 : index
    %c0_4 = arith.constant 0 : index
    %1 = vector.load %arg3[%c0_2, %c0_3, %c0_4] : memref<1x128x32xbf16, #tpu.memory_space<vmem>>, vector<1x128x32xbf16>
    %c0_5 = arith.constant 0 : index
    %c0_6 = arith.constant 0 : index
    %c0_7 = arith.constant 0 : index
    %2 = vector.load %arg4[%c0_5, %c0_6, %c0_7] : memref<1x32x128xbf16, #tpu.memory_space<vmem>>, vector<1x32x128xbf16>
    %c0_8 = arith.constant 0 : index
    %c0_9 = arith.constant 0 : index
    %c0_10 = arith.constant 0 : index
    %3 = vector.load %arg5[%c0_8, %c0_9, %c0_10] : memref<1x1x128xf32, #tpu.memory_space<vmem>>, vector<1x1x128xf32>
    %cst = arith.constant 0.176776692 : f32
    %4 = vector.broadcast %cst : f32 to vector<1x16x32xf32>
    %5 = arith.mulf %0, %4 : vector<1x16x32xf32>
    %6 = arith.truncf %5 : vector<1x16x32xf32> to vector<1x16x32xbf16>
    "tpu.trace_start"() <{level = 10 : i32, message = "bcd,bdq->bcq"}> : () -> ()
    %cst_11 = arith.constant dense<0.000000e+00> : vector<1x16x128xf32>
    %7 = tpu.matmul %6, %2, %cst_11 {dimension_numbers = #tpu.dot_dimension_numbers<[2], [1], [1], [2], [0, 0, 0, 1, 1, 2], [0], [0]>} : vector<1x16x32xbf16>, vector<1x32x128xbf16>, vector<1x16x128xf32> -> vector<1x16x128xf32>
    "tpu.trace_stop"() : () -> ()
    %8 = vector.broadcast %3 : vector<1x1x128xf32> to vector<1x16x128xf32>
    %9 = arith.addf %7, %8 : vector<1x16x128xf32>
    %cst_12 = arith.constant dense<0xFF800000> : vector<1x16xf32>
    %10 = vector.multi_reduction <maximumf>, %9, %cst_12 [2] : vector<1x16x128xf32> to vector<1x16xf32>
    %11 = vector.shape_cast %10 : vector<1x16xf32> to vector<1x16x1xf32>
    %12 = vector.broadcast %11 : vector<1x16x1xf32> to vector<1x16x128xf32>
    %13 = arith.subf %9, %12 : vector<1x16x128xf32>
    %14 = math.exp %13 : vector<1x16x128xf32>
    %cst_13 = arith.constant dense<0.000000e+00> : vector<1x16xf32>
    %15 = vector.multi_reduction <add>, %14, %cst_13 [2] : vector<1x16x128xf32> to vector<1x16xf32>
    %16 = vector.shape_cast %15 : vector<1x16xf32> to vector<1x16x1xf32>
    %17 = tpu.reciprocal %16 {approx = true} : vector<1x16x1xf32> -> vector<1x16x1xf32>
    %18 = vector.broadcast %17 : vector<1x16x1xf32> to vector<1x16x128xf32>
    %19 = arith.mulf %14, %18 : vector<1x16x128xf32>
    %20 = arith.truncf %19 : vector<1x16x128xf32> to vector<1x16x128xbf16>
    "tpu.trace_start"() <{level = 10 : i32, message = "bcq,bqd->bcd"}> : () -> ()
    %cst_14 = arith.constant dense<0.000000e+00> : vector<1x16x32xf32>
    %21 = tpu.matmul %20, %1, %cst_14 {dimension_numbers = #tpu.dot_dimension_numbers<[2], [1], [1], [2], [0, 0, 0, 1, 1, 2], [0], [0]>} : vector<1x16x128xbf16>, vector<1x128x32xbf16>, vector<1x16x32xf32> -> vector<1x16x32xf32>
    "tpu.trace_stop"() : () -> ()
    %c0_15 = arith.constant 0 : index
    %c0_16 = arith.constant 0 : index
    %c0_17 = arith.constant 0 : index
    %22 = vector.load %arg6[%c0_15, %c0_16, %c0_17] : memref<1x16x32xf32, #tpu.memory_space<vmem>>, vector<1x16x32xf32>
    tpu.vector_store %arg6[%c0_15, %c0_16, %c0_17], %21 {strides = array<i32>} : memref<1x16x32xf32, #tpu.memory_space<vmem>>, vector<1x16x32xf32>,
    return
  }
  func.func @transform_0(%arg0: i32, %arg1: i32) -> (i32, i32, i32) {
    %c0_i32 = arith.constant 0 : i32
    %c0_i32_0 = arith.constant 0 : i32
    return %arg0, %arg1, %c0_i32 : i32, i32, i32
  }
  func.func @transform_1(%arg0: i32, %arg1: i32) -> (i32, i32, i32) {
    %c0_i32 = arith.constant 0 : i32
    %c0_i32_0 = arith.constant 0 : i32
    %c0_i32_1 = arith.constant 0 : i32
    return %arg0, %c0_i32, %c0_i32_0 : i32, i32, i32
  }
  func.func @transform_2(%arg0: i32, %arg1: i32) -> (i32, i32, i32) {
    %c0_i32 = arith.constant 0 : i32
    %c0_i32_0 = arith.constant 0 : i32
    %c0_i32_1 = arith.constant 0 : i32
    return %arg0, %c0_i32, %c0_i32_0 : i32, i32, i32
  }
  func.func @transform_3(%arg0: i32, %arg1: i32) -> (i32, i32, i32) {
    %c0_i32 = arith.constant 0 : i32
    %c0_i32_0 = arith.constant 0 : i32
    %c0_i32_1 = arith.constant 0 : i32
    return %arg0, %c0_i32, %c0_i32_0 : i32, i32, i32
  }
  func.func @transform_4(%arg0: i32, %arg1: i32) -> (i32, i32, i32) {
    %c0_i32 = arith.constant 0 : i32
    %c0_i32_0 = arith.constant 0 : i32
    return %arg0, %arg1, %c0_i32 : i32, i32, i32
  }
}

</mosaic_0001>

<bundles_post_ra>
// kernel: tpu_custom_call.1
= control target key start
LH: loop header
LB: loop body
LE: loop exit
PB: predicated region body
PF: predicated region fallthrough
CT: control target
= control target key end

     0   :  { %9 = vsyncpa [#allocation3], 0  ;;  %s1018_s0 = inlined_call_operand.vmem [shape: f32[2,16,32], index: 0, kind: input, shape index: {}]   ;;  %s1019_s1 = inlined_call_operand.vmem [shape: bf16[2,128,32], index: 1, kind: input, shape index: {}]   ;;  %s1020_s2 = inlined_call_operand.vmem [shape: bf16[2,32,128], index: 2, kind: input, shape index: {}]   ;;  %s1021_s3 = inlined_call_operand.vmem [shape: f32[2,1,128], index: 3, kind: input, shape index: {}]   ;;  %s1022_s4 = inlined_call_operand.hbm [shape: f32[2,16,32], index: 4, kind: output, shape index: {}]  }
   0x1   :  { %11 = vsyncpa [#allocation3 + $0x1], 0  ;;  %s869_s15 = smov 0   ;;  %s871_s16 = smov 0  }
   0x2   :  { %s873_s17 = smov 0   ;;  %s875_s18 = smov 0  }
   0x3   :  { %s877_s19 = smov 0   ;;  %s879_s20 = smov 0  }
   0x4 LB: > { %s609_s21 = sadd.s32 4294967295, %s837_s20   ;;  %s610_s22 = sadd.s32 4294967294, %s837_s20   ;;  %s837_s20 = sphi %s879_s20, %s17_s20   ;;  %s833_s19 = sphi %s877_s19, %s1029_s19   ;;  %s829_s18 = sphi %s875_s18, %s1028_s18   ;;  %s825_s17 = sphi %s873_s17, %s1027_s17   ;;  %s821_s16 = sphi %s871_s16, %s1026_s16   ;;  %s817_s15 = sphi %s869_s15, %s1025_s15  }
   0x5   : > { %s29_s23 = sadd.s32 1, %s833_s19  ;;  %s144_s24 = sadd.s32 1, %s825_s17 }
   0x6   : > { %p31_p0 = scmp.ge.s32.totalorder %s29_s23, 2  ;;  %p154_p1 = scmp.ne.s32.totalorder %s825_s17, %s821_s16 }
   0x7   : > { %p155_p2 = scmp.eq.s32.totalorder %s609_s21, 1  ;;  %p160_p3 = scmp.ne.s32.totalorder %s821_s16, %s817_s15 }
   0x8   : > { %s1031_s23 = smov (%p31_p0, %s29_s23), 0  ;;  %p161_p5 = scmp.eq.s32.totalorder %s610_s22, 1 }
   0x9   : > { %p909_p4 = por %p155_p2, %p154_p1  ;;  %s139_s26 = ssub.s32 %s833_s19, %s1031_s23 }
   0xa   : > { %p613_p6 = scmp.ge.s32.totalorder %s837_s20, 1  ;;  %p142_p7 = scmp.eq.s32.totalorder %s139_s26, 0 }
   0xb   : > { %p916_p8 = por %p161_p5, %p160_p3  ;;  %p214_p9 = scmp.lt.s32.totalorder %s837_s20, 3 }
   0xc   : > { %s922_s28 = scalar_select %p142_p7, %s825_s17, %s144_s24  }
   0xd   : > { %p215_p10 = pnand %p613_p6, %p214_p9 }
   0xe   : > { %p258_p11 = scmp.lt.s32.totalorder (!%p215_p10), %s829_s18, 1  ;;  %v839_v0 = vmov (!%p215_p10), 0.0   ;;  %vm840_vm0 = vmmov (!%p215_p10), 0   ;;  %vm326_vm1 = vcmask (!%p215_p10), 261120   ;;  %s254_s26 = sand.u32 (!%p215_p10), 1, %s821_s16  }
   0xf   : > { %218 = sbr.rel (%p215_p10) target bundleno = 796 (0x31c), region = 36  ;;  %654 = vmatprep.subr.bf16.mxu0 (!%p215_p10), %v839_v0  ;;  %658 = vmatprep.mubr.msk.bf16.mxu0 (!%p215_p10), %vm840_vm0, %v839_v0  ;;  %s641_s6 = sshll.u32 (!%p215_p10), %s829_s18, 8 }
  0x10   : > { %662 = vmatprep.subr.bf16.mxu1 (!%p215_p10), %v839_v0  ;;  %678 = vmatprep.mubr.msk.bf16.mxu1 (!%p215_p10), %vm840_vm0, %v839_v0  ;;  %s968_s9 = scalar_lea.hbm (!%p215_p10), %s1022_s4, %s641_s6  ;;  %s972_s10 = scalar_lea.sflag (!%p215_p10), [#allocation3], %s254_s26 }
  0x16   : > { %s259_s29 = scalar_select %p258_p11, %s829_s18, 1 }
  0x18   : > { %s638_s30 = sshll.u32 %s259_s29, 4  ;;  %s639_s5 = sshll.u32 %s259_s29, 6 }
  0x19   : > { %s265_s8 = scalar_lea.vmem %s1018_s0, %s638_s30  ;;  %s936_s11 = scalar_lea.vmem %s1019_s1, %s639_s5 }
  0x1a   : > { %s276_s14 = scalar_lea.vmem %s1020_s2, %s638_s30  ;;  %v282_v1 = vld [vmem:[%s265_s8] sm:$0xff]  ;;  %v283_v2 = vld [vmem:[%s265_s8 + $0x8] sm:$0xff]  ;;  %s279_s24 = scalar_lea.vmem %s1021_s3, %s259_s29  ;;  %v745_v17 = vld [vmem:[%s936_s11 + $0x10] sm:$0xff]  }
  0x1b   : > { %v741_v3 = vld [vmem:[%s276_s14] sm:$0xff]   ;;  %v742_v4 = vld [vmem:[%s276_s14 + $0x8] sm:$0xff]   ;;  %v305_v5 = vmul.f32 0.17677669, %v282_v1  ;;  %v306_v6 = vmul.f32 0.17677669, %v283_v2 }
  0x1c   : > { %655 = vmatpush3.bf16.msra.mxu0 %v741_v3  ;;  %v621_v8 = vld [vmem:[%s279_s24] ss:$0 sm:$0xff]  ;;  %v744_v16 = vld [vmem:[%s936_s11 + $0x8] sm:$0xff]   ;;  %v746_v26 = vld [vmem:[%s936_s11 + $0x18] sm:$0xff]   ;;  %s614_s29 = sshll.u32 %s254_s26, 4 }
  0x1d   : > { %656 = vmatprep.subr.bf16.mxu0 %v839_v0  ;;  %v307_v7 = vpack.c.bf16 %v306_v6, %v305_v5  ;;  %v743_v15 = vld [vmem:[%s936_s11] sm:$0xff]   ;;  %v748_v28 = vld [vmem:[%s936_s11 + $0x28] sm:$0xff]   ;;  %v749_v29 = vld [vmem:[%s936_s11 + $0x30] sm:$0xff]   ;;  %s256_s30 = scalar_lea.vmem [#allocation2], %s614_s29 }
  0x1e   : > { %663 = vmatpush3.bf16.msra.mxu1 %v743_v15  ;;  %v747_v27 = vld [vmem:[%s936_s11 + $0x20] sm:$0xff]   ;;  %v750_v30 = vld [vmem:[%s936_s11 + $0x38] sm:$0xff]   ;;  %s497_s5 = sshll.u32 %s256_s30, 4  ;;  %s841_s11 = smov [#allocation2]   ;;  %s963_s5 = int_to_ptr.vmem [resolvable:$true] %s497_s5 }
  0x1f   : > { %664 = vmatprep.subr.bf16.mxu1 %v839_v0  ;;  %s759_s18 = scalar_lea.vmem %s963_s5, 256  ;;  %s763_s12 = sshll.u32 %s841_s11, 4  ;;  %s764_s12 = int_to_ptr.vmem [resolvable:$false] %s763_s12 }
  0x20   : > { %657 = vmatpush3.bf16.msra.mxu0 %v742_v4  ;;  %p760_p12 = scmp.ne.s32.totalorder %s963_s5, %s759_s18  ;;  %s765_s13 = scalar_lea.vmem %s764_s12, 512 }
  0x21   : > { %p766_p1 = scmp.lt.s32.totalorder %s963_s5, %s764_s12  ;;  %p767_p2 = scmp.lt.s32.totalorder %s765_s13, %s759_s18 }
  0x22   : > { %665 = vmatpush3.bf16.msra.mxu1 %v744_v16  ;;  %p761_p13 = pnand %p760_p12, %p909_p4 }
  0x23   : > { %659 = vmatmul.mubr.msk.bf16.vlgmr.msra.gmra.mrb[0].mxu0 %vm326_vm1, %v307_v7  ;;  %666 = vmatprep.subr.bf16.mxu1 %v839_v0  ;;  %p768_p3 = por %p767_p2, %p766_p1 }
  0x24   : > { %p762_p0 = pneg %p761_p13 }
  0x26   : > { %667 = vmatpush3.bf16.msra.mxu1 %v745_v17  ;;  %p769_p5 = pnand %p768_p3, %p762_p0 }
  0x27   : > { %668 = vmatprep.subr.bf16.mxu1 %v839_v0 }
  0x2a   : > { %669 = vmatpush3.bf16.msra.mxu1 %v746_v26 }
  0x2b   : > { %670 = vmatprep.subr.bf16.mxu1 %v839_v0 }
  0x2e   : > { %671 = vmatpush3.bf16.msra.mxu1 %v747_v27 }
  0x2f   : > { %672 = vmatprep.subr.bf16.mxu1 %v839_v0 }
  0x32   : > { %673 = vmatpush3.bf16.msra.mxu1 %v748_v28 }
  0x33   : > { %674 = vmatprep.subr.bf16.mxu1 %v839_v0 }
  0x36   : > { %675 = vmatpush3.bf16.msra.mxu1 %v749_v29 }
  0x37   : > { %676 = vmatprep.subr.bf16.mxu1 %v839_v0 }
  0x3a   : > { %677 = vmatpush3.bf16.msra.mxu1 %v750_v30 }
  0xf6   : > { %v364_v9 = vpop.f32.mrb[0].mxu0 }
  0xf7   : > { %v365_v10 = vadd.f32 %v621_v8, %v364_v9  ;;  %v660_v11 = vpop.f32.mrb[1].mxu0 }
  0xf8   : > { %v367_v12 = vpop.f32.mrb[2].mxu0 }
  0xf9   : > { %v368_v13 = vadd.f32 %v621_v8, %v367_v12  ;;  %371 = vmax.xlane.f32.xlu0 %v365_v10  ;;  %v661_v14 = vpop.f32.mrb[3].mxu0 }
  0xfd   : > { %373 = vmax.xlane.f32.xlu0 %v368_v13 }
 0x186   : > { %v372_v18 = vpop.xlane.xlu0 %371 }
 0x187   : > { %v375_v19 = vsub.f32 %v365_v10, %v372_v18 }
 0x189   : > { %v377_v20 = vmul.f32 1.442695, %v375_v19 }
 0x18a   : > { %v374_v21 = vpop.xlane.xlu0 %373 }
 0x18b   : > { %751 = vpow2.f32 %v377_v20  ;;  %v376_v22 = vsub.f32 %v368_v13, %v374_v21 }
 0x18d   : > { %v379_v23 = vmul.f32 1.442695, %v376_v22 }
 0x18f   : > { %753 = vpow2.f32 %v379_v23 }
 0x195   : > { %v752_v24 = vpop.eup %751 }
 0x196   : > { %381 = vadd.xlane.f32.xlu1 %v752_v24 }
 0x199   : > { %v754_v25 = vpop.eup %753 }
 0x19a   : > { %383 = vadd.xlane.f32.xlu1 %v754_v25 }
 0x223   : > { %v382_v31 = vpop.xlane.xlu1 %381 }
 0x224   : > { %755 = vrcp.f32 %v382_v31 }
 0x227   : > { %v384_v32 = vpop.xlane.xlu1 %383 }
 0x228   : > { %757 = vrcp.f32 %v384_v32 }
 0x22e   : > { %v756_v33 = vpop.eup %755 }
 0x22f   : > { %v387_v35 = vmul.f32 %v756_v33, %v752_v24 }
 0x232   : > { %v758_v34 = vpop.eup %757 }
 0x233   : > { %v388_v36 = vmul.f32 %v758_v34, %v754_v25 }
 0x235   : > { %v389_v37 = vpack.c.bf16 %v388_v36, %v387_v35 }
 0x237   : > { %679 = vmatmul.mubr.bf16.vlgmr.msra.gmra.mrb[0].mxu1 %v389_v37 }
 0x30a   : > { %v472_v38 = vpop.f32.mrb[0].mxu1 }
 0x30b   : > { %479 = vst.msk [vmem:[%s256_s30] sm:$0xff] %vm326_vm1, %v472_v38  ;;  %v680_v39 = vpop.f32.mrb[1].mxu1 }
 0x30c   : > { %v475_v40 = vpop.f32.mrb[2].mxu1 }
 0x30d   : > { %480 = vst.msk [vmem:[%s256_s30 + $0x8] sm:$0xff] %vm326_vm1, %v475_v40  ;;  %v681_v41 = vpop.f32.mrb[3].mxu1 }
 0x30e   : > { %772 = shalt.err (!%p769_p5)
}
 0x30f   : > { %s773_s14 = scalar_lea.hbm %s968_s9, 256  ;;  %s777_s24 = scalar_lea.hbm %s1022_s4, 512 }
 0x310   : > { %p774_p6 = scmp.ne.s32.totalorder %s968_s9, %s773_s14  ;;  %p778_p10 = scmp.lt.u32.totalorder %s968_s9, %s1022_s4 }
 0x311   : > { %p779_p11 = scmp.lt.u32.totalorder %s777_s24, %s773_s14  ;;  %p781_p13 = scmp.lt.u32.totalorder %s773_s14, %s968_s9 }
 0x312   : > { %p775_p7 = pnand %p774_p6, %p909_p4 }
 0x313   : > { %p780_p12 = por %p779_p11, %p778_p10 }
 0x314   : > { %p776_p9 = pneg %p775_p7 }
 0x315   : > { %p782_p0 = por %p781_p13, %p780_p12 }
 0x317   : > { %p783_p1 = pnand %p782_p0, %p776_p9 }
 0x319   : > { %786 = shalt.err (!%p783_p1)
}
 0x31a   : > { %s842_s30 = smov 128   ;;  %s843_s6 = smov 8  }
 0x31b   : > { %682 = dma.vmem_to_hbm [thread:$0]  (%p909_p4), %s963_s5, 256, %s968_s9, %s972_s10, %s842_s30, %s842_s30, %s843_s6  }
 0x31c PF: > { %p688_p2 = scmp.ge.s32.totalorder %s837_s20, 2  ;;  %s512_s7 = sand.u32 1, %s817_s15  }
 0x31d   : > { %s513_s8 = scalar_lea.sflag [#allocation3], %s512_s7 }
 0x31e   : > { %p685_p3 = pnand %p688_p2, %p916_p8 }
 0x320   : > { %812 = dma.done.wait (!%p685_p3), %s513_s8, 256  }
 0x321   : > { %814 = vsyncadd (!%p685_p3), %s513_s8, 4294967040  ;;  %s17_s20 = sadd.s32 1, %s837_s20   ;;  %s1025_s15 = smov %s821_s16 }
 0x322   : > { %p14_p5 = scmp.ge.s32.totalorder %s17_s20, 4   ;;  %s1026_s16 = smov %s825_s17 }
 0x323   : > { %s1027_s17 = smov %s922_s28  ;;  %s1028_s18 = smov %s833_s19 }
 0x324   : > { %s1029_s19 = smov %s1031_s23  ;;  %16 = sbr.rel (!%p14_p5) target bundleno = 4 (0x4), region = 80 }
 0x32b   :  { %518 = vsyncpa [#allocation3], 1 }
 0x32c   :  { %520 = vsyncpa [#allocation3 + $0x1], 1 }

</bundles_post_ra>
